<compile_context>
chip_gen: v7x
topology: tpu7x:2x2x1
jax: 0.10.0
libtpu: 0.0.40
codegen_flags: <defaults>
</compile_context>

<pallas_src>
import numpy as np
import jax
import jax.numpy as jnp
from jax import lax
from jax.experimental import pallas as pl
from jax.experimental.pallas import tpu as pltpu


def _round_up(x, m):
    return ((x + m - 1) // m) * m


# ----------------------------- Pallas kernel -------------------------------

def dan_kernel(idx_ref, table_ref, vw_ref, vb_ref, ww_ref, wb_ref, out_ref):
    # idx_ref   : (TB, L)        int32   token indices (0 = padding row)
    # table_ref : (VOCAB, E)     float32 embedding table (row 0 == zeros)
    # vw_ref    : (H, E)         float32 V weight, pre-scaled by 1/L
    # vb_ref    : (1, H)         float32
    # ww_ref    : (C_pad, H)     float32 W weight, zero-padded classes
    # wb_ref    : (1, C_pad)     float32 W bias, padded lanes = -1e30
    # out_ref   : (TB, C_pad)    float32 log-probs
    idx = idx_ref[...]                                              # (TB, L)
    tb, seq_len = idx.shape
    vocab = table_ref.shape[0]

    # Embedding gather + sum-pool as a one-hot matmul (vocab is VMEM-resident).
    # counts[b, v] = #{ l : idx[b, l] == v }, so counts @ table == sum_l emb[b, l].
    # TODO(synk): for large vocabularies, replace with a scalar-prefetched DMA
    # row-gather from an HBM-resident table instead of a VMEM one-hot matmul.
    vocab_ids = lax.broadcasted_iota(jnp.int32, (tb, seq_len, vocab), 2)
    onehot = (idx[:, :, None] == vocab_ids).astype(jnp.float32)     # (TB, L, V)
    counts = jnp.sum(onehot, axis=1)                                # (TB, V)

    pooled = lax.dot_general(                                       # (TB, E)
        counts, table_ref[...], (((1,), (0,)), ((), ())),
        preferred_element_type=jnp.float32)

    # h = tanh(mean_emb @ Vw.T + Vb); the 1/L factor is folded into vw.
    # dot_general contracts last dims of both operands -> no in-kernel transpose.
    h = lax.dot_general(                                            # (TB, H)
        pooled, vw_ref[...], (((1,), (1,)), ((), ())),
        preferred_element_type=jnp.float32)
    h = jnp.tanh(h + vb_ref[...])

    logits = lax.dot_general(                                       # (TB, C_pad)
        h, ww_ref[...], (((1,), (1,)), ((), ())),
        preferred_element_type=jnp.float32)
    logits = logits + wb_ref[...]                                   # pads -> -1e30

    # log_softmax along the (lane-dense, 128-wide) class axis; padded lanes
    # contribute exp(-1e30) == 0 to the LSE.
    m = jnp.max(logits, axis=1, keepdims=True)
    shifted = logits - m
    lse = jnp.log(jnp.sum(jnp.exp(shifted), axis=1, keepdims=True))
    out_ref[...] = shifted - lse


# ------------------------------- wrapper ------------------------------------

def dan_forward(idx_lb, vectors, v_weight, v_bias, w_weight, w_bias):
    """DAN forward.

    idx_lb   : (L, B) int token indices, PyTorch (max_length, batch) layout.
    vectors  : (VOCAB, E) float32 embedding table (row 0 = padding vector).
    v_weight : (H, E), v_bias: (H,), w_weight: (C, H), w_bias: (C,).
    Returns (B, C) float32 log-probabilities.
    """
    L, B = idx_lb.shape
    vocab, E = vectors.shape
    H = v_weight.shape[0]
    C = w_weight.shape[0]

    # Batch tile: multiple of 8 sublanes, capped at 128 rows per grid step.
    TB = min(_round_up(B, 8), 128)
    B_pad = _round_up(B, TB)
    idx_bl = jnp.zeros((B_pad, L), jnp.int32).at[:B, :].set(
        idx_lb.astype(jnp.int32).T)                    # pad rows use idx 0 (zero emb)

    # Lane-dense class dim: pad C to a multiple of 128; mask pads via -1e30 bias.
    C_pad = _round_up(C, 128)
    ww = jnp.zeros((C_pad, H), jnp.float32).at[:C, :].set(w_weight.astype(jnp.float32))
    wb = jnp.full((1, C_pad), -1e30, jnp.float32).at[0, :C].set(w_bias.astype(jnp.float32))

    # Fold the 1/L of the mean-pool into V's weight (pool becomes a plain sum).
    vw = (v_weight.astype(jnp.float32) / jnp.float32(L))
    vb = v_bias.astype(jnp.float32).reshape(1, H)

    grid = (B_pad // TB,)
    out = pl.pallas_call(
        dan_kernel,
        out_shape=jax.ShapeDtypeStruct((B_pad, C_pad), jnp.float32),
        grid_spec=pltpu.PrefetchScalarGridSpec(
            num_scalar_prefetch=0,
            grid=grid,
            in_specs=[
                pl.BlockSpec((TB, L), lambda i: (i, 0)),        # indices (batch-tiled)
                pl.BlockSpec((vocab, E), lambda i: (0, 0)),     # embedding table
                pl.BlockSpec((H, E), lambda i: (0, 0)),         # V weight (pre-scaled)
                pl.BlockSpec((1, H), lambda i: (0, 0)),         # V bias
                pl.BlockSpec((C_pad, H), lambda i: (0, 0)),     # W weight (class-padded)
                pl.BlockSpec((1, C_pad), lambda i: (0, 0)),     # W bias (-1e30 padded)
            ],
            out_specs=pl.BlockSpec((TB, C_pad), lambda i: (i, 0)),
        ),
        compiler_params=pltpu.CompilerParams(
            dimension_semantics=("parallel",),
        ),
    )(idx_bl, vectors.astype(jnp.float32), vw, vb, ww, wb)

    return out[:B, :C]


# ---------------------------- parameter setup -------------------------------

def xavier_uniform(key, shape):
    fan_out, fan_in = shape
    bound = float(np.sqrt(6.0 / (fan_in + fan_out)))
    return jax.random.uniform(key, shape, jnp.float32, -bound, bound)


if __name__ == "__main__":
    # Small but lane/MXU-aligned shapes consistent with the DAN module.
    VOCAB = 128       # embedding table rows (row 0 = padding)
    EMB = 128         # embedding dim == `input` of nn.Linear V
    HIDDEN = 128
    OUTPUT = 4        # number of classes
    BATCH = 2
    MAX_LEN = 8       # max sentence length in the batch

    key = jax.random.PRNGKey(0)
    k_emb, k_v, k_w, k_idx = jax.random.split(key, 4)

    # Pretrained-style embedding table (row 0 is the padding vector = zeros).
    vectors = jax.random.normal(k_emb, (VOCAB, EMB), jnp.float32)
    vectors = vectors.at[0].set(0.0)

    # Linear layers: xavier_uniform weights, zero biases (deterministic).
    v_weight = xavier_uniform(k_v, (HIDDEN, EMB))
    v_bias = jnp.zeros((HIDDEN,), jnp.float32)
    w_weight = xavier_uniform(k_w, (OUTPUT, HIDDEN))
    w_bias = jnp.zeros((OUTPUT,), jnp.float32)

    # Simulated tokenized batch: indices laid out (max_length, batch) like the
    # PyTorch np.zeros((max_length, batch_size)); zeros are padding.
    idx = jax.random.randint(k_idx, (MAX_LEN, BATCH), 1, VOCAB, dtype=jnp.int32)
    idx = idx.at[6:, 0].set(0)   # first sentence shorter -> padded with 0

    out = dan_forward(idx, vectors, v_weight, v_bias, w_weight, w_bias)
    out = jax.block_until_ready(out)

    # Pure-JAX reference of the same PyTorch math.
    embedded = vectors[idx]                       # (L, B, E)
    avg_ref = jnp.mean(embedded, axis=0)          # (B, E) — padding rows included
    h_ref = jnp.tanh(avg_ref @ v_weight.T + v_bias)
    logits_ref = h_ref @ w_weight.T + w_bias
    ref = jax.nn.log_softmax(logits_ref, axis=1)

    assert out.shape == (BATCH, OUTPUT)
    assert np.allclose(np.asarray(out), np.asarray(ref), atol=1e-4), "mismatch vs reference"

    print("KERNEL_OK")
</pallas_src>

<mosaic_0001>
module attributes {stable_mosaic.version = 11 : i64} {
  func.func @dan_kernel(%arg0: i32, %arg1: memref<8x8xi32, #tpu.memory_space<vmem>>, %arg2: memref<128x128xf32, #tpu.memory_space<vmem>>, %arg3: memref<128x128xf32, #tpu.memory_space<vmem>>, %arg4: memref<1x128xf32, #tpu.memory_space<vmem>>, %arg5: memref<128x128xf32, #tpu.memory_space<vmem>>, %arg6: memref<1x128xf32, #tpu.memory_space<vmem>>, %arg7: memref<8x128xf32, #tpu.memory_space<vmem>>) attributes {dimension_semantics = [#tpu.dimension_semantics<parallel>], iteration_bounds = array<i64: 1>, scalar_prefetch = 0 : i64, scratch_operands = 0 : i64, tpu.core_type = #tpu.core_type<tc>, window_params = [{transform_indices = @transform_0, window_bounds = array<i64: 8, 8>}, {pipeline_mode = #tpu.pipeline_mode<synchronous>, transform_indices = @transform_1, window_bounds = array<i64: 128, 128>}, {pipeline_mode = #tpu.pipeline_mode<synchronous>, transform_indices = @transform_2, window_bounds = array<i64: 128, 128>}, {pipeline_mode = #tpu.pipeline_mode<synchronous>, transform_indices = @transform_3, window_bounds = array<i64: 1, 128>}, {pipeline_mode = #tpu.pipeline_mode<synchronous>, transform_indices = @transform_4, window_bounds = array<i64: 128, 128>}, {pipeline_mode = #tpu.pipeline_mode<synchronous>, transform_indices = @transform_5, window_bounds = array<i64: 1, 128>}, {transform_indices = @transform_6, window_bounds = array<i64: 8, 128>}]} {
    %c0 = arith.constant 0 : index
    %c0_0 = arith.constant 0 : index
    %0 = vector.load %arg1[%c0, %c0_0] : memref<8x8xi32, #tpu.memory_space<vmem>>, vector<8x8xi32>
    %1 = tpu.iota {dimensions = array<i32: 2>} : vector<8x8x128xi32>
    %2 = vector.shape_cast %0 : vector<8x8xi32> to vector<8x8x1xi32>
    %3 = vector.broadcast %2 : vector<8x8x1xi32> to vector<8x8x128xi32>
    %4 = arith.cmpi eq, %3, %1 : vector<8x8x128xi32>
    %5 = arith.extui %4 : vector<8x8x128xi1> to vector<8x8x128xi32>
    %6 = arith.sitofp %5 : vector<8x8x128xi32> to vector<8x8x128xf32>
    %cst = arith.constant dense<0.000000e+00> : vector<8x128xf32>
    %7 = vector.multi_reduction <add>, %6, %cst [1] : vector<8x8x128xf32> to vector<8x128xf32>
    %c0_1 = arith.constant 0 : index
    %c0_2 = arith.constant 0 : index
    %8 = vector.load %arg2[%c0_1, %c0_2] : memref<128x128xf32, #tpu.memory_space<vmem>>, vector<128x128xf32>
    %cst_3 = arith.constant dense<0.000000e+00> : vector<8x128xf32>
    %9 = tpu.matmul %7, %8, %cst_3 {dimension_numbers = #tpu.dot_dimension_numbers<[1], [0], [0], [1], [0, 0, 1, 1], [], []>} : vector<8x128xf32>, vector<128x128xf32>, vector<8x128xf32> -> vector<8x128xf32>
    %c0_4 = arith.constant 0 : index
    %c0_5 = arith.constant 0 : index
    %10 = vector.load %arg3[%c0_4, %c0_5] : memref<128x128xf32, #tpu.memory_space<vmem>>, vector<128x128xf32>
    %cst_6 = arith.constant dense<0.000000e+00> : vector<8x128xf32>
    %11 = tpu.matmul %9, %10, %cst_6 {dimension_numbers = #tpu.dot_dimension_numbers<[1], [1], [0], [0], [0, 0, 1, 0], [], []>} : vector<8x128xf32>, vector<128x128xf32>, vector<8x128xf32> -> vector<8x128xf32>
    %c0_7 = arith.constant 0 : index
    %c0_8 = arith.constant 0 : index
    %12 = vector.load %arg4[%c0_7, %c0_8] : memref<1x128xf32, #tpu.memory_space<vmem>>, vector<1x128xf32>
    %13 = vector.broadcast %12 : vector<1x128xf32> to vector<8x128xf32>
    %14 = arith.addf %11, %13 : vector<8x128xf32>
    %15 = math.tanh %14 : vector<8x128xf32>
    %c0_9 = arith.constant 0 : index
    %c0_10 = arith.constant 0 : index
    %16 = vector.load %arg5[%c0_9, %c0_10] : memref<128x128xf32, #tpu.memory_space<vmem>>, vector<128x128xf32>
    %cst_11 = arith.constant dense<0.000000e+00> : vector<8x128xf32>
    %17 = tpu.matmul %15, %16, %cst_11 {dimension_numbers = #tpu.dot_dimension_numbers<[1], [1], [0], [0], [0, 0, 1, 0], [], []>} : vector<8x128xf32>, vector<128x128xf32>, vector<8x128xf32> -> vector<8x128xf32>
    %c0_12 = arith.constant 0 : index
    %c0_13 = arith.constant 0 : index
    %18 = vector.load %arg6[%c0_12, %c0_13] : memref<1x128xf32, #tpu.memory_space<vmem>>, vector<1x128xf32>
    %19 = vector.broadcast %18 : vector<1x128xf32> to vector<8x128xf32>
    %20 = arith.addf %17, %19 : vector<8x128xf32>
    %cst_14 = arith.constant dense<0xFF800000> : vector<8xf32>
    %21 = vector.multi_reduction <maximumf>, %20, %cst_14 [1] : vector<8x128xf32> to vector<8xf32>
    %22 = vector.shape_cast %21 : vector<8xf32> to vector<8x1xf32>
    %23 = vector.broadcast %22 : vector<8x1xf32> to vector<8x128xf32>
    %24 = arith.subf %20, %23 : vector<8x128xf32>
    %25 = math.exp %24 : vector<8x128xf32>
    %cst_15 = arith.constant dense<0.000000e+00> : vector<8xf32>
    %26 = vector.multi_reduction <add>, %25, %cst_15 [1] : vector<8x128xf32> to vector<8xf32>
    %27 = vector.shape_cast %26 : vector<8xf32> to vector<8x1xf32>
    %28 = math.log %27 : vector<8x1xf32>
    %29 = vector.broadcast %28 : vector<8x1xf32> to vector<8x128xf32>
    %30 = arith.subf %24, %29 : vector<8x128xf32>
    %c0_16 = arith.constant 0 : index
    %c0_17 = arith.constant 0 : index
    %31 = vector.load %arg7[%c0_16, %c0_17] : memref<8x128xf32, #tpu.memory_space<vmem>>, vector<8x128xf32>
    tpu.vector_store %arg7[%c0_16, %c0_17], %30 {strides = array<i32>} : memref<8x128xf32, #tpu.memory_space<vmem>>, vector<8x128xf32>,
    return
  }
  func.func @transform_0(%arg0: i32) -> (i32, i32) {
    %c0_i32 = arith.constant 0 : i32
    %c0_i32_0 = arith.constant 0 : i32
    return %arg0, %c0_i32 : i32, i32
  }
  func.func @transform_1(%arg0: i32) -> (i32, i32) {
    %c0_i32 = arith.constant 0 : i32
    %c0_i32_0 = arith.constant 0 : i32
    %c0_i32_1 = arith.constant 0 : i32
    return %c0_i32, %c0_i32_0 : i32, i32
  }
  func.func @transform_2(%arg0: i32) -> (i32, i32) {
    %c0_i32 = arith.constant 0 : i32
    %c0_i32_0 = arith.constant 0 : i32
    %c0_i32_1 = arith.constant 0 : i32
    return %c0_i32, %c0_i32_0 : i32, i32
  }
  func.func @transform_3(%arg0: i32) -> (i32, i32) {
    %c0_i32 = arith.constant 0 : i32
    %c0_i32_0 = arith.constant 0 : i32
    %c0_i32_1 = arith.constant 0 : i32
    return %c0_i32, %c0_i32_0 : i32, i32
  }
  func.func @transform_4(%arg0: i32) -> (i32, i32) {
    %c0_i32 = arith.constant 0 : i32
    %c0_i32_0 = arith.constant 0 : i32
    %c0_i32_1 = arith.constant 0 : i32
    return %c0_i32, %c0_i32_0 : i32, i32
  }
  func.func @transform_5(%arg0: i32) -> (i32, i32) {
    %c0_i32 = arith.constant 0 : i32
    %c0_i32_0 = arith.constant 0 : i32
    %c0_i32_1 = arith.constant 0 : i32
    return %c0_i32, %c0_i32_0 : i32, i32
  }
  func.func @transform_6(%arg0: i32) -> (i32, i32) {
    %c0_i32 = arith.constant 0 : i32
    %c0_i32_0 = arith.constant 0 : i32
    return %arg0, %c0_i32 : i32, i32
  }
}

</mosaic_0001>

<bundles_post_ra>
// kernel: tpu_custom_call.1
= control target key start
LH: loop header
LB: loop body
LE: loop exit
PB: predicated region body
PF: predicated region fallthrough
CT: control target
= control target key end

     0   :  { %11 = vsyncpa [#allocation3], 0  ;;  %s1065_s0 = inlined_call_operand.hbm [shape: s32[8,8], index: 0, kind: input, shape index: {}]   ;;  %s1066_s1 = inlined_call_operand.hbm [shape: f32[128,128], index: 1, kind: input, shape index: {}]   ;;  %s1067_s2 = inlined_call_operand.hbm [shape: f32[128,128], index: 2, kind: input, shape index: {}]   ;;  %s1068_s3 = inlined_call_operand.vmem [shape: f32[1,128], index: 3, kind: input, shape index: {}]   ;;  %s1069_s4 = inlined_call_operand.hbm [shape: f32[128,128], index: 4, kind: input, shape index: {}]   ;;  %s1070_s5 = inlined_call_operand.vmem [shape: f32[1,128], index: 5, kind: input, shape index: {}]   ;;  %s1071_s6 = inlined_call_operand.hbm [shape: f32[8,128], index: 6, kind: output, shape index: {}]  }
   0x1   :  { %12 = vsyncpa [#allocation6], 0 }
   0x2   :  { %13 = vsyncpa [#allocation9], 0 }
   0x3   :  { %14 = vsyncpa [#allocation4], 0  ;;  %s904_s21 = smov [#allocation5]   ;;  %s786_s25 = scalar_lea.hbm %s1066_s1, 2048 }
   0x4   :  { %s30_s22 = sshll.u32 %s904_s21, 4  ;;  %p787_p0 = scmp.ne.s32.totalorder %s1066_s1, %s786_s25  ;;  %s31_s22 = int_to_ptr.vmem [resolvable:$true] %s30_s22 }
   0x5   :  { %p790_p1 = scmp.lt.u32.totalorder %s786_s25, %s1066_s1 }
   0x7   :  { %p792_p2 = pnand %p790_p1, %p787_p0 }
   0x9   :  { %795 = shalt.err (!%p792_p2)
}
   0xa   :  { %s796_s30 = scalar_lea.vmem %s31_s22, 2048  ;;  %p801_p4 = scmp.lt.s32.totalorder %s31_s22, %s31_s22 }
   0xb   :  { %p797_p3 = scmp.ne.s32.totalorder %s31_s22, %s796_s30  ;;  %p802_p5 = scmp.lt.s32.totalorder %s796_s30, %s796_s30 }
   0xd   :  { %p803_p6 = por %p802_p5, %p801_p4 }
   0xf   :  { %p804_p7 = pnand %p803_p6, %p797_p3 }
  0x11   :  { %807 = shalt.err (!%p804_p7)
}
  0x12   :  { %s905_s7 = smov 128   ;;  %s906_s8 = smov 8  }
  0x13   :  { %36 = dma.hbm_to_vmem [thread:$0]  %s1066_s1, 2048, %s31_s22, [#allocation6], %s905_s7, %s905_s7, %s906_s8  }
  0x14   :  { %s907_s11 = smov [#allocation2]   ;;  %s908_s13 = smov [#allocation7]  }
  0x15   :  { %s21_s12 = sshll.u32 %s907_s11, 4  ;;  %s42_s14 = sshll.u32 %s908_s13, 4  ;;  %s22_s12 = int_to_ptr.vmem [resolvable:$true] %s21_s12  ;;  %s43_s14 = int_to_ptr.vmem [resolvable:$true] %s42_s14 }
  0x16   :  { %s808_s17 = scalar_lea.hbm %s1065_s0, 128 }
  0x17   :  { %p809_p8 = scmp.ne.s32.totalorder %s1065_s0, %s808_s17  ;;  %p812_p9 = scmp.lt.u32.totalorder %s808_s17, %s1065_s0 }
  0x19   :  { %p814_p10 = pnand %p812_p9, %p809_p8 }
  0x1b   :  { %817 = shalt.err (!%p814_p10)
}
  0x1c   :  { %s818_s1 = scalar_lea.vmem %s22_s12, 128  ;;  %p823_p12 = scmp.lt.s32.totalorder %s22_s12, %s22_s12 }
  0x1d   :  { %p819_p11 = scmp.ne.s32.totalorder %s22_s12, %s818_s1  ;;  %p824_p13 = scmp.lt.s32.totalorder %s818_s1, %s818_s1 }
  0x1f   :  { %p825_p0 = por %p824_p13, %p823_p12 }
  0x21   :  { %p826_p1 = pnand %p825_p0, %p819_p11 }
  0x23   :  { %829 = shalt.err (!%p826_p1)
}
  0x24   :  { %24 = dma.hbm_to_vmem [thread:$0]  %s1065_s0, 128, %s22_s12, [#allocation3]  }
  0x25   :  { %s830_s26 = scalar_lea.hbm %s1067_s2, 2048 }
  0x26   :  { %p831_p2 = scmp.ne.s32.totalorder %s1067_s2, %s830_s26  ;;  %p834_p3 = scmp.lt.u32.totalorder %s830_s26, %s1067_s2 }
  0x28   :  { %p836_p4 = pnand %p834_p3, %p831_p2 }
  0x2a   :  { %839 = shalt.err (!%p836_p4)
}
  0x2b   :  { %s840_s9 = scalar_lea.vmem %s43_s14, 2048  ;;  %p845_p6 = scmp.lt.s32.totalorder %s43_s14, %s43_s14 }
  0x2c   :  { %p841_p5 = scmp.ne.s32.totalorder %s43_s14, %s840_s9  ;;  %p846_p7 = scmp.lt.s32.totalorder %s840_s9, %s840_s9 }
  0x2e   :  { %p847_p8 = por %p846_p7, %p845_p6 }
  0x30   :  { %p848_p9 = pnand %p847_p8, %p841_p5 }
  0x32   :  { %851 = shalt.err (!%p848_p9)
}
  0x33   :  { %48 = dma.hbm_to_vmem [thread:$0]  %s1067_s2, 2048, %s43_s14, [#allocation6], %s905_s7, %s905_s7, %s906_s8  }
  0x34   :  { %s909_s11 = smov [#allocation8]   ;;  %s852_s16 = scalar_lea.hbm %s1069_s4, 2048 }
  0x35   :  { %s56_s12 = sshll.u32 %s909_s11, 4  ;;  %p853_p10 = scmp.ne.s32.totalorder %s1069_s4, %s852_s16  ;;  %s57_s12 = int_to_ptr.vmem [resolvable:$true] %s56_s12 }
  0x36   :  { %p856_p11 = scmp.lt.u32.totalorder %s852_s16, %s1069_s4 }
  0x38   :  { %p858_p12 = pnand %p856_p11, %p853_p10 }
  0x3a   :  { %861 = shalt.err (!%p858_p12)
}
  0x3b   :  { %s862_s21 = scalar_lea.vmem %s57_s12, 2048  ;;  %p867_p0 = scmp.lt.s32.totalorder %s57_s12, %s57_s12 }
  0x3c   :  { %p863_p13 = scmp.ne.s32.totalorder %s57_s12, %s862_s21  ;;  %p868_p1 = scmp.lt.s32.totalorder %s862_s21, %s862_s21 }
  0x3e   :  { %p869_p2 = por %p868_p1, %p867_p0 }
  0x40   :  { %p870_p3 = pnand %p869_p2, %p863_p13 }
  0x42   :  { %873 = shalt.err (!%p870_p3)
}
  0x43   :  { %62 = dma.hbm_to_vmem [thread:$0]  %s1069_s4, 2048, %s57_s12, [#allocation9], %s905_s7, %s905_s7, %s906_s8  }
  0x44   :  { %896 = dma.done.wait [#allocation3], 128  }
  0x45   :  { %897 = vsyncadd [#allocation3], 4294967168 }
  0x46   :  { %898 = dma.done.wait [#allocation6], 4096  }
  0x47   :  { %899 = vsyncadd [#allocation6], 4294963200 }
  0x48   :  { %900 = dma.done.wait [#allocation9], 2048  }
  0x49   :  { %901 = vsyncadd [#allocation9], 4294965248  ;;  %v78_v0 = vlaneseq  ;;  %v910_v1 = vmov 0.0|0.0   ;;  %v77_v7 = vld [vmem:[#allocation2] sm:$0xff]  ;;  %v208_v8 = vld [vmem:[#allocation5] sm:$0xff]  ;;  %vm911_vm0 = vmmov 0  }
  0x4a   :  { %698 = vmatprep.subr.bf16.mxu0 %v910_v1  ;;  %722 = vmatprep.subr.bf16.mxu1 %v910_v1  ;;  %v209_v9 = vld [vmem:[#allocation5 + $0x8] sm:$0xff]  ;;  %v210_v13 = vld [vmem:[#allocation5 + $0x10] sm:$0xff]  ;;  %v211_v14 = vld [vmem:[#allocation5 + $0x18] sm:$0xff]  ;;  %v912_v34 = vmov 0.0   ;;  %vm232_vm7 = vcmask 1041409   ;;  %vm234_vm10 = vcmask 1042434  }
  0x4b   :  { %v81_v2 = vshrl.u32 %v78_v0, 7  ;;  %v699_v18 = vpack.c.bf16 %v209_v9, %v208_v8  ;;  %v702_v19 = vpack.c.bf16 %v211_v14, %v210_v13  ;;  %v212_v20 = vld [vmem:[#allocation5 + $0x20] sm:$0xff]  ;;  %v213_v21 = vld [vmem:[#allocation5 + $0x28] sm:$0xff]  ;;  %v214_v27 = vld [vmem:[#allocation5 + $0x30] sm:$0xff]  ;;  %625 = vmatprep.mubr.msk.f32.mxu0 %vm911_vm0, %v912_v34  ;;  %660 = vmatprep.mubr.msk.f32.mxu1 %vm911_vm0, %v912_v34  ;;  %vm236_vm11 = vcmask 1043459  }
  0x4c   :  { %v705_v26 = vpack.c.bf16 %v213_v21, %v212_v20  ;;  %v215_v28 = vld [vmem:[#allocation5 + $0x38] sm:$0xff]  ;;  %v216_v32 = vld [vmem:[#allocation5 + $0x40] sm:$0xff]  ;;  %v217_v33 = vld [vmem:[#allocation5 + $0x48] sm:$0xff]  ;;  %vm238_vm12 = vcmask 1044484   ;;  %vm240_vm13 = vcmask 1045509   ;;  %vm242_vm14 = vcmask 1046534  }
  0x4d   :  { %v96_v3 = vsub.s32 2, %v81_v2  ;;  %v82_v4 = vsub.s32 0, %v81_v2  ;;  %v103_v5 = vsub.s32 3, %v81_v2  ;;  %v89_v6 = vsub.s32 1, %v81_v2  ;;  %700 = vmatpush3.bf16.msra.mxu0 %v699_v18  ;;  %v218_v36 = vld [vmem:[#allocation5 + $0x50] sm:$0xff]  ;;  %v219_v37 = vld [vmem:[#allocation5 + $0x58] sm:$0xff] }
  0x4e   :  { %v117_v12 = vsub.s32 5, %v81_v2  ;;  %v110_v17 = vsub.s32 4, %v81_v2  ;;  %701 = vmatprep.subr.bf16.mxu0 %v910_v1  ;;  %v131_v24 = vsub.s32 7, %v81_v2  ;;  %v124_v25 = vsub.s32 6, %v81_v2  ;;  %v317_v38 = vld [vmem:[#allocation7] sm:$0xff]  ;;  %v318_v39 = vld [vmem:[#allocation7 + $0x8] sm:$0xff] }
  0x4f   :  { %v97_v10 = vrot.slane %v77_v7, %v96_v3  ;;  %v83_v11 = vrot.slane %v77_v7, %v82_v4  ;;  %v104_v15 = vrot.slane %v77_v7, %v103_v5  ;;  %v90_v16 = vrot.slane %v77_v7, %v89_v6  ;;  %v220_v42 = vld [vmem:[#allocation5 + $0x60] sm:$0xff]  ;;  %v221_v43 = vld [vmem:[#allocation5 + $0x68] sm:$0xff]  ;;  %v319_v44 = vld [vmem:[#allocation7 + $0x10] sm:$0xff] }
  0x50   :  { %v118_v22 = vrot.slane %v77_v7, %v117_v12  ;;  %v111_v23 = vrot.slane %v77_v7, %v110_v17  ;;  %v132_v29 = vrot.slane %v77_v7, %v131_v24  ;;  %v125_v30 = vrot.slane %v77_v7, %v124_v25  ;;  %v320_v45 = vld [vmem:[#allocation7 + $0x18] sm:$0xff]  ;;  %v222_v47 = vld [vmem:[#allocation5 + $0x70] sm:$0xff]  ;;  %v321_v51 = vld [vmem:[#allocation7 + $0x20] sm:$0xff] }
  0x51   :  { %99 = vbcast.lane.b32.xlu1 %v97_v10, 256  ;;  %85 = vbcast.lane.b32.xlu0 %v83_v11, 256  ;;  %v708_v31 = vpack.c.bf16 %v215_v28, %v214_v27  ;;  %v711_v35 = vpack.c.bf16 %v217_v33, %v216_v32  ;;  %v723_v40 = vpack.c.bf16 %v318_v39, %v317_v38  ;;  %v223_v48 = vld [vmem:[#allocation5 + $0x78] sm:$0xff]  ;;  %v322_v52 = vld [vmem:[#allocation7 + $0x28] sm:$0xff]  ;;  %v323_v54 = vld [vmem:[#allocation7 + $0x30] sm:$0xff]  ;;  %v79_v7 = vand.u32 127, %v78_v0 }
  0x52   :  { %703 = vmatpush3.bf16.msra.mxu0 %v702_v19  ;;  %v714_v41 = vpack.c.bf16 %v219_v37, %v218_v36  ;;  %v717_v46 = vpack.c.bf16 %v221_v43, %v220_v42  ;;  %v726_v49 = vpack.c.bf16 %v320_v45, %v319_v44  ;;  %v720_v50 = vpack.c.bf16 %v223_v48, %v222_v47  ;;  %v324_v55 = vld [vmem:[#allocation7 + $0x38] sm:$0xff]  ;;  %v325_v57 = vld [vmem:[#allocation7 + $0x40] sm:$0xff]  ;;  %v326_v58 = vld [vmem:[#allocation7 + $0x48] sm:$0xff] }
  0x53   :  { %704 = vmatprep.subr.bf16.mxu0 %v910_v1  ;;  %724 = vmatpush3.bf16.xpose.msra.mxu1 %v723_v40  ;;  %v729_v53 = vpack.c.bf16 %v322_v52, %v321_v51  ;;  %v732_v56 = vpack.c.bf16 %v324_v55, %v323_v54  ;;  %v735_v59 = vpack.c.bf16 %v326_v58, %v325_v57  ;;  %v327_v60 = vld [vmem:[#allocation7 + $0x50] sm:$0xff]  ;;  %v328_v61 = vld [vmem:[#allocation7 + $0x58] sm:$0xff]  ;;  %v329_v63 = vld [vmem:[#allocation7 + $0x60] sm:$0xff]  ;;  %vm244_vm15 = vcmask 1047559  }
  0x54   :  { %725 = vmatprep.subr.bf16.mxu1 %v910_v1  ;;  %v738_v62 = vpack.c.bf16 %v328_v61, %v327_v60  ;;  %v330_v2 = vld [vmem:[#allocation7 + $0x68] sm:$0xff]  ;;  %v331_v4 = vld [vmem:[#allocation7 + $0x70] sm:$0xff]  ;;  %v332_v5 = vld [vmem:[#allocation7 + $0x78] sm:$0xff] }
  0x55   :  { %106 = vbcast.lane.b32.xlu1 %v104_v15, 256  ;;  %92 = vbcast.lane.b32.xlu0 %v90_v16, 256  ;;  %v741_v3 = vpack.c.bf16 %v330_v2, %v329_v63  ;;  %v744_v6 = vpack.c.bf16 %v332_v5, %v331_v4 }
  0x56   :  { %706 = vmatpush3.bf16.msra.mxu0 %v705_v26 }
  0x57   :  { %707 = vmatprep.subr.bf16.mxu0 %v910_v1 }
  0x59   :  { %120 = vbcast.lane.b32.xlu1 %v118_v22, 256  ;;  %113 = vbcast.lane.b32.xlu0 %v111_v23, 256 }
  0x5a   :  { %709 = vmatpush3.bf16.msra.mxu0 %v708_v31 }
  0x5b   :  { %710 = vmatprep.subr.bf16.mxu0 %v910_v1  ;;  %727 = vmatpush3.bf16.xpose.msra.mxu1 %v726_v49 }
  0x5c   :  { %728 = vmatprep.subr.bf16.mxu1 %v910_v1 }
  0x5d   :  { %134 = vbcast.lane.b32.xlu1 %v132_v29, 256  ;;  %127 = vbcast.lane.b32.xlu0 %v125_v30, 256 }
  0x5e   :  { %712 = vmatpush3.bf16.msra.mxu0 %v711_v35 }
  0x5f   :  { %713 = vmatprep.subr.bf16.mxu0 %v910_v1 }
  0x62   :  { %715 = vmatpush3.bf16.msra.mxu0 %v714_v41 }
  0x63   :  { %716 = vmatprep.subr.bf16.mxu0 %v910_v1  ;;  %730 = vmatpush3.bf16.xpose.msra.mxu1 %v729_v53 }
  0x64   :  { %731 = vmatprep.subr.bf16.mxu1 %v910_v1 }
  0x66   :  { %718 = vmatpush3.bf16.msra.mxu0 %v717_v46 }
  0x67   :  { %719 = vmatprep.subr.bf16.mxu0 %v910_v1 }
  0x6a   :  { %721 = vmatpush3.bf16.msra.mxu0 %v720_v50 }
  0x6b   :  { %746 = vmatprep.subr.bf16.mxu0 %v910_v1  ;;  %733 = vmatpush3.bf16.xpose.msra.mxu1 %v732_v56 }
  0x6c   :  { %734 = vmatprep.subr.bf16.mxu1 %v910_v1 }
  0x73   :  { %736 = vmatpush3.bf16.xpose.msra.mxu1 %v735_v59 }
  0x74   :  { %737 = vmatprep.subr.bf16.mxu1 %v910_v1 }
  0x7b   :  { %739 = vmatpush3.bf16.xpose.msra.mxu1 %v738_v62 }
  0x7c   :  { %740 = vmatprep.subr.bf16.mxu1 %v910_v1 }
  0x83   :  { %742 = vmatpush3.bf16.xpose.msra.mxu1 %v741_v3 }
  0x84   :  { %743 = vmatprep.subr.bf16.mxu1 %v910_v1 }
  0x8b   :  { %745 = vmatpush3.bf16.xpose.msra.mxu1 %v744_v6 }
  0xc3   :  { %v100_v8 = vpop.permute.xlu1 %99  ;;  %v86_v9 = vpop.permute.xlu0 %85 }
  0xc4   :  { %vm138_vm1 = vcmp.eq.s32.totalorder %v100_v8, %v79_v7  ;;  %vm136_vm2 = vcmp.eq.s32.totalorder %v86_v9, %v79_v7 }
  0xc5   :  { %v534_v10 = vsel %vm138_vm1, 1.0, %v912_v34  ;;  %v532_v11 = vsel %vm136_vm2, 1.0, %v912_v34 }
  0xc6   :  { %v172_v12 = vrot.slane %v534_v10, 4  ;;  %v160_v13 = vrot.slane %v532_v11, 4 }
  0xc7   :  { %v107_v14 = vpop.permute.xlu1 %106  ;;  %v93_v15 = vpop.permute.xlu0 %92 }
  0xc8   :  { %v173_v16 = vadd.f32 %v534_v10, %v172_v12  ;;  %v161_v17 = vadd.f32 %v532_v11, %v160_v13  ;;  %vm139_vm3 = vcmp.eq.s32.totalorder %v107_v14, %v79_v7  ;;  %vm137_vm4 = vcmp.eq.s32.totalorder %v93_v15, %v79_v7 }
  0xc9   :  { %v535_v18 = vsel %vm139_vm3, 1.0, %v912_v34  ;;  %v533_v0 = vsel %vm137_vm4, 1.0, %v912_v34 }
  0xca   :  { %v174_v19 = vrot.slane %v173_v16, 2  ;;  %v162_v20 = vrot.slane %v161_v17, 2  ;;  %v178_v21 = vrot.slane %v535_v18, 4  ;;  %v166_v22 = vrot.slane %v533_v0, 4 }
  0xcb   :  { %v121_v23 = vpop.permute.xlu1 %120  ;;  %v114_v24 = vpop.permute.xlu0 %113 }
  0xcc   :  { %v163_v25 = vadd.f32 %v162_v20, %v161_v17  ;;  %v179_v26 = vadd.f32 %v535_v18, %v178_v21  ;;  %v167_v27 = vadd.f32 %v533_v0, %v166_v22  ;;  %vm141_vm5 = vcmp.eq.s32.totalorder %v121_v23, %v79_v7  ;;  %v411_v17 = vld [vmem:[#allocation8] sm:$0xff]  ;;  %v412_v18 = vld [vmem:[#allocation8 + $0x8] sm:$0xff]  ;;  %v414_v20 = vld [vmem:[#allocation8 + $0x18] sm:$0xff] }
  0xcd   :  { %vm140_vm6 = vcmp.eq.s32.totalorder %v114_v24, %v79_v7  ;;  %v175_v28 = vadd.f32 %v174_v19, %v173_v16  ;;  %v537_v31 = vsel %vm141_vm5, 1.0, %v912_v34  ;;  %v747_v0 = vpack.c.bf16 %v412_v18, %v411_v17  ;;  %v413_v19 = vld [vmem:[#allocation8 + $0x10] sm:$0xff]  ;;  %v415_v22 = vld [vmem:[#allocation8 + $0x20] sm:$0xff]  ;;  %v416_v23 = vld [vmem:[#allocation8 + $0x28] sm:$0xff] }
  0xce   :  { %v180_v29 = vrot.slane %v179_v26, 2  ;;  %v168_v30 = vrot.slane %v167_v27, 2  ;;  %v536_v32 = vsel %vm140_vm6, 1.0, %v912_v34  ;;  %v164_v36 = vrot.slane %v163_v25, 1 }
  0xcf   :  { %v135_v33 = vpop.permute.xlu1 %134  ;;  %v128_v35 = vpop.permute.xlu0 %127  ;;  %v190_v39 = vrot.slane %v537_v31, 4  ;;  %v184_v40 = vrot.slane %v536_v32, 4  ;;  %v176_v41 = vrot.slane %v175_v28, 1  ;;  %v750_v21 = vpack.c.bf16 %v414_v20, %v413_v19 }
  0xd0   :  { %v181_v37 = vadd.f32 %v180_v29, %v179_v26  ;;  %v169_v38 = vadd.f32 %v168_v30, %v167_v27  ;;  %vm143_vm8 = vcmp.eq.s32.totalorder %v135_v33, %v79_v7  ;;  %vm142_vm9 = vcmp.eq.s32.totalorder %v128_v35, %v79_v7  ;;  %v419_v27 = vld [vmem:[#allocation8 + $0x40] sm:$0xff]  ;;  %v421_v30 = vld [vmem:[#allocation8 + $0x50] sm:$0xff]  ;;  %v424_v35 = vld [vmem:[#allocation8 + $0x68] sm:$0xff] }
  0xd1   :  { %v539_v43 = vsel %vm143_vm8, 1.0, %v912_v34  ;;  %v538_v44 = vsel %vm142_vm9, 1.0, %v912_v34  ;;  %v191_v45 = vadd.f32 %v537_v31, %v190_v39  ;;  %v185_v46 = vadd.f32 %v536_v32, %v184_v40  ;;  %v422_v31 = vld [vmem:[#allocation8 + $0x58] sm:$0xff]  ;;  %v423_v33 = vld [vmem:[#allocation8 + $0x60] sm:$0xff]  ;;  %v425_v39 = vld [vmem:[#allocation8 + $0x70] sm:$0xff] }
  0xd2   :  { %v170_v42 = vrot.slane %v169_v38, 1  ;;  %v202_v47 = vrot.slane %v539_v43, 4  ;;  %v196_v48 = vrot.slane %v538_v44, 4  ;;  %v165_v49 = vadd.f32 %v164_v36, %v163_v25  ;;  %v417_v25 = vld [vmem:[#allocation8 + $0x30] sm:$0xff]  ;;  %v426_v40 = vld [vmem:[#allocation8 + $0x78] sm:$0xff] }
  0xd3   :  { %v182_v50 = vrot.slane %v181_v37, 1  ;;  %v192_v52 = vrot.slane %v191_v45, 2  ;;  %v186_v53 = vrot.slane %v185_v46, 2  ;;  %v177_v56 = vadd.f32 %v176_v41, %v175_v28  ;;  %v420_v28 = vld [vmem:[#allocation8 + $0x48] sm:$0xff] }
  0xd4   :  { %v171_v51 = vadd.f32 %v170_v42, %v169_v38  ;;  %v203_v54 = vadd.f32 %v539_v43, %v202_v47  ;;  %v197_v55 = vadd.f32 %v538_v44, %v196_v48  ;;  %v753_v24 = vpack.c.bf16 %v416_v23, %v415_v22  ;;  %v540_v42 = vld [vmem:[%s1068_s3] ss:$0 sm:$0xff]  ;;  %s913_s3 = smov [#allocation10]  }
  0xd5   :  { %v193_v58 = vadd.f32 %v192_v52, %v191_v45  ;;  %v187_v59 = vadd.f32 %v186_v53, %v185_v46  ;;  %v183_v62 = vadd.f32 %v182_v50, %v181_v37  ;;  %v759_v29 = vpack.c.bf16 %v420_v28, %v419_v27  ;;  %s521_s22 = sshll.u32 %s913_s3, 4  ;;  %s522_s22 = int_to_ptr.vmem [resolvable:$true] %s521_s22 }
  0xd6   :  { %v233_v57 = vsel %vm232_vm7, %v171_v51, %v165_v49  ;;  %v204_v60 = vrot.slane %v203_v54, 2  ;;  %v198_v61 = vrot.slane %v197_v55, 2  ;;  %v762_v32 = vpack.c.bf16 %v422_v31, %v421_v30  ;;  %p879_p5 = scmp.lt.s32.totalorder %s522_s22, %s522_s22 }
  0xd7   :  { %v235_v63 = vsel %vm234_vm10, %v177_v56, %v233_v57  ;;  %v194_v2 = vrot.slane %v193_v58, 1  ;;  %v188_v3 = vrot.slane %v187_v59, 1  ;;  %v765_v36 = vpack.c.bf16 %v424_v35, %v423_v33 }
  0xd8   :  { %v205_v4 = vadd.f32 %v204_v60, %v203_v54  ;;  %v199_v5 = vadd.f32 %v198_v61, %v197_v55  ;;  %v237_v6 = vsel %vm236_vm11, %v183_v62, %v235_v63  ;;  %v768_v41 = vpack.c.bf16 %v426_v40, %v425_v39 }
  0xd9   :  { %v195_v7 = vadd.f32 %v194_v2, %v193_v58  ;;  %v189_v8 = vadd.f32 %v188_v3, %v187_v59 }
  0xda   :  { %v206_v9 = vrot.slane %v205_v4, 1  ;;  %v200_v10 = vrot.slane %v199_v5, 1 }
  0xdb   :  { %v239_v13 = vsel %vm238_vm12, %v189_v8, %v237_v6 }
  0xdc   :  { %v201_v11 = vadd.f32 %v200_v10, %v199_v5  ;;  %v207_v12 = vadd.f32 %v206_v9, %v205_v4  ;;  %v241_v14 = vsel %vm240_vm13, %v195_v7, %v239_v13 }
  0xde   :  { %v243_v15 = vsel %vm242_vm14, %v201_v11, %v241_v14 }
  0xdf   :  { %v245_v16 = vsel %vm244_vm15, %v207_v12, %v243_v15 }
  0xe0   :  { %626 = vmatmul.mubr.f32.vlgmr.msra.gmra.mrb[0].mxu0 %v245_v16 }
  0xe1   :  { %695 = vmatprep.mubr.msk.f32.mxu0 %vm911_vm0, %v912_v34  ;;  %748 = vmatpush3.bf16.xpose.msra.mxu0 %v747_v0  ;;  %v418_v34 = vld [vmem:[#allocation8 + $0x38] sm:$0xff] }
  0xe2   :  { %749 = vmatprep.subr.bf16.mxu0 %v910_v1  ;;  %v756_v26 = vpack.c.bf16 %v418_v34, %v417_v25 }
  0xe9   :  { %751 = vmatpush3.bf16.xpose.msra.mxu0 %v750_v21 }
  0xea   :  { %752 = vmatprep.subr.bf16.mxu0 %v910_v1 }
  0xf1   :  { %754 = vmatpush3.bf16.xpose.msra.mxu0 %v753_v24 }
  0xf2   :  { %755 = vmatprep.subr.bf16.mxu0 %v910_v1 }
  0xf9   :  { %757 = vmatpush3.bf16.xpose.msra.mxu0 %v756_v26 }
  0xfa   :  { %758 = vmatprep.subr.bf16.mxu0 %v910_v1 }
 0x101   :  { %760 = vmatpush3.bf16.xpose.msra.mxu0 %v759_v29 }
 0x102   :  { %761 = vmatprep.subr.bf16.mxu0 %v910_v1 }
 0x109   :  { %763 = vmatpush3.bf16.xpose.msra.mxu0 %v762_v32 }
 0x10a   :  { %764 = vmatprep.subr.bf16.mxu0 %v910_v1 }
 0x111   :  { %766 = vmatpush3.bf16.xpose.msra.mxu0 %v765_v36 }
 0x112   :  { %767 = vmatprep.subr.bf16.mxu0 %v910_v1  ;;  %v541_v1 = vld [vmem:[%s1070_s5] ss:$0 sm:$0xff]  ;;  %s874_s5 = scalar_lea.vmem %s522_s22, 128 }
 0x113   :  { %p875_p4 = scmp.ne.s32.totalorder %s522_s22, %s874_s5  ;;  %p880_p6 = scmp.lt.s32.totalorder %s874_s5, %s874_s5 }
 0x115   :  { %p881_p7 = por %p880_p6, %p879_p5 }
 0x117   :  { %p882_p8 = pnand %p881_p7, %p875_p4 }
 0x119   :  { %769 = vmatpush3.bf16.xpose.msra.mxu0 %v768_v41 }
 0x1b3   :  { %v313_v37 = vpop.f32.mrb[0].mxu0 }
 0x1b4   :  { %v627_v38 = vpop.f32.mrb[1].mxu0  ;;  %661 = vmatmul.mubr.f32.vlgmr.msra.gmra.mrb[0].mxu1 %v313_v37 }
 0x287   :  { %v406_v43 = vpop.f32.mrb[0].mxu1 }
 0x288   :  { %v407_v44 = vadd.f32 %v540_v42, %v406_v43  ;;  %v662_v45 = vpop.f32.mrb[1].mxu1 }
 0x28a   :  { %780 = vtanh.f32 %v407_v44 }
 0x294   :  { %v781_v46 = vpop.eup %780 }
 0x295   :  { %696 = vmatmul.mubr.f32.vlgmr.msra.gmra.mrb[2].mxu0 %v781_v46 }
 0x368   :  { %v500_v47 = vpop.f32.mrb[2].mxu0 }
 0x369   :  { %v501_v48 = vadd.f32 %v541_v1, %v500_v47  ;;  %v697_v49 = vpop.f32.mrb[3].mxu0 }
 0x36b   :  { %504 = vmax.xlane.f32.xlu0 %v501_v48 }
 0x3f8   :  { %v505_v50 = vpop.xlane.xlu0 %504 }
 0x3f9   :  { %v506_v51 = vsub.f32 %v501_v48, %v505_v50 }
 0x3fb   :  { %v507_v52 = vmul.f32 1.442695, %v506_v51 }
 0x3fd   :  { %782 = vpow2.f32 %v507_v52 }
 0x407   :  { %v783_v53 = vpop.eup %782 }
 0x408   :  { %509 = vadd.xlane.f32.xlu1 %v783_v53 }
 0x495   :  { %v510_v54 = vpop.xlane.xlu1 %509 }
 0x496   :  { %784 = vlog2.f32 %v510_v54 }
 0x4a0   :  { %v785_v55 = vpop.eup %784 }
 0x4a1   :  { %v512_v56 = vmul.f32 0.6931472, %v785_v55 }
 0x4a3   :  { %v513_v57 = vsub.f32 %v506_v51, %v512_v56 }
 0x4a5   :  { %514 = vst [vmem:[#allocation10] sm:$0xff] %v513_v57 }
 0x4a6   :  { %885 = shalt.err (!%p882_p8)
}
 0x4a7   :  { %s886_s25 = scalar_lea.hbm %s1071_s6, 128 }
 0x4a8   :  { %p887_p9 = scmp.ne.s32.totalorder %s1071_s6, %s886_s25  ;;  %p890_p10 = scmp.lt.u32.totalorder %s886_s25, %s1071_s6 }
 0x4aa   :  { %p892_p11 = pnand %p890_p10, %p887_p9 }
 0x4ac   :  { %895 = shalt.err (!%p892_p11)
}
 0x4ad   :  { %524 = dma.vmem_to_hbm [thread:$0]  %s522_s22, 128, %s1071_s6, [#allocation4]  }
 0x4ae   :  { %902 = dma.done.wait [#allocation4], 128  }
 0x4af   :  { %903 = vsyncadd [#allocation4], 4294967168 }
 0x4b0   :  { %528 = vsyncpa [#allocation3], 1 }
 0x4b1   :  { %529 = vsyncpa [#allocation6], 1 }
 0x4b2   :  { %530 = vsyncpa [#allocation9], 1 }
 0x4b3   :  { %531 = vsyncpa [#allocation4], 1 }

</bundles_post_ra>
